<compile_context>
chip_gen: v7x
topology: tpu7x:2x2x1
jax: 0.10.0
libtpu: 0.0.40
codegen_flags: <defaults>
</compile_context>

<pallas_src>
import functools

import jax
import jax.numpy as jnp
from jax.experimental import pallas as pl
from jax.experimental.pallas import tpu as pltpu


def _focal_loss_kernel(confs_ref, bbox_ref, gtb_ref, lbl_ref, anc_ref,
                       alpha_ref, acc_ref, *, gamma, scale_xy, scale_wh):
    t = pl.program_id(2)

    # Each (batch, split) pair owns its accumulator block; zero it at the first
    # anchor tile of that block (anchor-tile axis is the innermost, "arbitrary").
    @pl.when(t == 0)
    def _():
        acc_ref[...] = jnp.zeros_like(acc_ref)

    # ---- classification (focal) loss, evaluated only at the target class ----
    logits = confs_ref[0]                                     # (C, T) f32
    labels = lbl_ref[0]                                       # (1, T) int32
    cls_iota = jax.lax.broadcasted_iota(jnp.int32, logits.shape, 0)
    mask = cls_iota == labels                                 # (C, T) bool

    m = jnp.max(logits, axis=0, keepdims=True)                # (1, T)
    z = logits - m                                            # (C, T)
    lse = jnp.log(jnp.sum(jnp.exp(z), axis=0, keepdims=True))  # (1, T)

    # Target-class gathers via select (single vselect each, no f32 cast).
    z_lbl = jnp.sum(jnp.where(mask, z, 0.0), axis=0, keepdims=True)
    alpha_lbl = jnp.sum(jnp.where(mask, alpha_ref[...], 0.0),
                        axis=0, keepdims=True)

    logp_lbl = z_lbl - lse                                    # log softmax @ label
    p_lbl = jnp.exp(logp_lbl)                                 # softmax @ label

    one_minus = 1.0 - p_lbl
    if gamma == 0.0:
        pw = jnp.ones_like(one_minus)
    elif float(gamma).is_integer() and 0.0 < gamma <= 4.0:
        pw = one_minus
        for _ in range(int(gamma) - 1):
            pw = pw * one_minus
    else:
        pw = jnp.power(one_minus, gamma)                      # (1, T) only

    cls_vec = -(alpha_lbl * pw * logp_lbl)                    # (1, T)

    # ---- regression (smooth L1 on positives); split xy / wh, no concat ------
    gt = gtb_ref[0]                                           # (4, T) xywh
    anc = anc_ref[0]                                          # (4, T)
    bd = bbox_ref[0]                                          # (4, T)
    anc_wh = anc[2:, :]

    gxy = scale_xy * (gt[:2, :] - anc[:2, :]) / anc_wh
    gwh = scale_wh * jnp.log(gt[2:, :] / anc_wh)

    d_xy = bd[:2, :] - gxy
    d_wh = bd[2:, :] - gwh
    a_xy = jnp.abs(d_xy)
    a_wh = jnp.abs(d_wh)
    sl1 = (jnp.where(a_xy < 1.0, 0.5 * d_xy * d_xy, a_xy - 0.5)
           + jnp.where(a_wh < 1.0, 0.5 * d_wh * d_wh, a_wh - 0.5))   # (2, T)

    pos = labels > 0                                          # (1, T) bool
    reg_vec = jnp.where(pos, jnp.sum(sl1, axis=0, keepdims=True), 0.0)
    npos_vec = pos.astype(jnp.float32)

    # Lane-wise accumulation into rows 0/1/2 of the fused (8, T) accumulator.
    acc_ref[0:1, :] += cls_vec
    acc_ref[1:2, :] += reg_vec
    acc_ref[2:3, :] += npos_vec


def _round_up(x, m):
    return ((x + m - 1) // m) * m


def _pick_tile(na, tile_req, n_split):
    """Largest multiple-of-128 tile <= tile_req that minimizes anchor padding."""
    t_max = max(128, min(_round_up(tile_req, 128), _round_up(na, 128)))
    best_t, best_pad = None, None
    for t in range(t_max, 0, -128):
        pad = _round_up(na, t * n_split) - na
        if best_pad is None or pad < best_pad:
            best_t, best_pad = t, pad
    return best_t, best_pad


def focal_loss_forward(bbox_delta, confs, gt_bbox, gt_labels,
                       anchors, alpha, gamma, scale_xy, scale_wh,
                       *, tile_na=2048, num_splits=2):
    """
    bbox_delta: [B, 4, NA] f32
    confs:      [B, C, NA] f32
    gt_bbox:    [B, NA, 4] f32
    gt_labels:  [B, NA]    int
    anchors:    [1, 4, NA] f32 (xywh)
    alpha:      [C]        f32
    """
    B, C, NA = confs.shape

    # ---- tile / split selection ---------------------------------------------
    n_split = max(1, int(num_splits))
    tile, pad = _pick_tile(NA, tile_na, n_split)
    if n_split > 1 and pad * 4 > NA:       # splitting would cost >25% padding
        n_split = 1
        tile, pad = _pick_tile(NA, tile_na, 1)
    assert tile % 128 == 0
    NA_pad = NA + pad
    tiles_per_split = NA_pad // (tile * n_split)
    tps = tiles_per_split

    # ---- wrapper-side layout (kept minimal: confs is NOT class-padded) ------
    confs = confs.astype(jnp.float32)
    bbox_delta = bbox_delta.astype(jnp.float32)
    # TODO(synk): if the producer can emit gt_bbox as [B, 4, NA] (or stacked
    # with bbox_delta as [B, 8, NA]) directly, drop this transpose — it is an
    # extra HBM read+write of a 4xNA tensor per call.
    gt_bbox_t = jnp.swapaxes(gt_bbox, 1, 2).astype(jnp.float32)      # [B, 4, NA]
    labels_2d = gt_labels.astype(jnp.int32)[:, None, :]              # [B, 1, NA]
    anchors = anchors.astype(jnp.float32)
    alpha_b = jnp.broadcast_to(alpha.astype(jnp.float32).reshape(C, 1),
                               (C, tile))

    if pad:
        # Sentinel padding: label = -1 never matches any class (cls term = 0,
        # not a positive so reg / num_pos terms = 0); w/h padded with 1.0 keeps
        # the log finite.  TODO(synk): emit NA already padded upstream for real
        # SSD shapes (NA = 8732) to avoid this extra HBM pass over confs.
        confs = jnp.pad(confs, ((0, 0), (0, 0), (0, pad)))
        bbox_delta = jnp.pad(bbox_delta, ((0, 0), (0, 0), (0, pad)))
        gt_bbox_t = jnp.pad(gt_bbox_t, ((0, 0), (0, 0), (0, pad)),
                            constant_values=1.0)
        labels_2d = jnp.pad(labels_2d, ((0, 0), (0, 0), (0, pad)),
                            constant_values=-1)
        anchors = jnp.pad(anchors, ((0, 0), (0, 0), (0, pad)),
                          constant_values=1.0)

    grid = (B, n_split, tiles_per_split)

    kernel = functools.partial(
        _focal_loss_kernel,
        gamma=float(gamma), scale_xy=float(scale_xy), scale_wh=float(scale_wh))

    in_specs = [
        pl.BlockSpec((1, C, tile), lambda b, s, t: (b, 0, s * tps + t)),  # confs
        pl.BlockSpec((1, 4, tile), lambda b, s, t: (b, 0, s * tps + t)),  # bbox_delta
        pl.BlockSpec((1, 4, tile), lambda b, s, t: (b, 0, s * tps + t)),  # gt_bbox (T)
        pl.BlockSpec((1, 1, tile), lambda b, s, t: (b, 0, s * tps + t)),  # gt_labels
        pl.BlockSpec((1, 4, tile), lambda b, s, t: (0, 0, s * tps + t)),  # anchors
        pl.BlockSpec((C, tile), lambda b, s, t: (0, 0)),                  # alpha
    ]
    # Fused per-(batch, split) accumulator: rows 0/1/2 = cls / reg / num_pos.
    out_specs = pl.BlockSpec((None, None, 8, tile),
                             lambda b, s, t: (b, s, 0, 0))
    out_shape = jax.ShapeDtypeStruct((B, n_split, 8, tile), jnp.float32)

    acc = pl.pallas_call(
        kernel,
        out_shape=out_shape,
        grid_spec=pltpu.PrefetchScalarGridSpec(
            num_scalar_prefetch=0,
            grid=grid,
            in_specs=in_specs,
            out_specs=out_specs,
        ),
        compiler_params=pltpu.CompilerParams(
            dimension_semantics=("parallel", "parallel", "arbitrary")),
    )(confs, bbox_delta, gt_bbox_t, labels_2d, anchors, alpha_b)

    # Tiny cross-lane reductions + final division in plain JAX glue.
    cls_sum = jnp.sum(acc[:, :, 0, :])
    reg_sum = jnp.sum(acc[:, :, 1, :])
    num_pos = jnp.sum(acc[:, :, 2, :])   # NOTE: 0 positives -> NaN (mirrors PyTorch)

    regression_loss = reg_sum / num_pos
    classification_loss = cls_sum / num_pos
    total_loss = regression_loss + classification_loss
    to_log = dict(regression_loss=regression_loss,
                  classification_loss=classification_loss,
                  total_loss=total_loss)
    return total_loss, to_log


def _reference_jax(bbox_delta, confs, gt_bbox, gt_labels,
                   anchors, alpha, gamma, scale_xy, scale_wh):
    """Pure-JAX mirror of the PyTorch forward (for verification)."""
    gt_t = jnp.swapaxes(gt_bbox, 1, 2)
    logp = jax.nn.log_softmax(confs, axis=1)
    p = jax.nn.softmax(confs, axis=1)
    C = confs.shape[1]
    oh = jax.nn.one_hot(gt_labels, C, dtype=jnp.float32).transpose(0, 2, 1)
    a = alpha.reshape(1, C, 1)
    cls = jnp.sum(-a * (1.0 - p) ** gamma * oh * logp)
    gxy = scale_xy * (gt_t[:, :2] - anchors[:, :2]) / anchors[:, 2:]
    gwh = scale_wh * jnp.log(gt_t[:, 2:] / anchors[:, 2:])
    gloc = jnp.concatenate([gxy, gwh], axis=1)
    diff = bbox_delta - gloc
    ad = jnp.abs(diff)
    sl1 = jnp.where(ad < 1.0, 0.5 * diff * diff, ad - 0.5)
    pos = (gt_labels > 0)[:, None, :]
    reg = jnp.sum(jnp.where(pos, sl1, 0.0))
    npos = jnp.sum(pos).astype(jnp.float32)
    return reg / npos + cls / npos


if __name__ == "__main__":
    # Small, deterministic synthetic setup (stand-in for AnchorBoxes / alpha).
    # C is intentionally NOT a multiple of 8 and NA NOT a multiple of 128, so
    # the demo exercises the ragged class block and the sentinel anchor pad.
    B, C, NA = 2, 6, 1000
    gamma = 2.0
    scale_xy = 10.0        # 1 / 0.1
    scale_wh = 5.0         # 1 / 0.2

    key = jax.random.PRNGKey(0)
    k1, k2, k3, k4, k5 = jax.random.split(key, 5)

    bbox_delta = jax.random.normal(k1, (B, 4, NA), dtype=jnp.float32)
    confs = jax.random.normal(k2, (B, C, NA), dtype=jnp.float32)
    # gt boxes in xywh with strictly positive w/h so the log is well defined
    gt_xy = jax.random.uniform(k3, (B, NA, 2), minval=0.0, maxval=1.0)
    gt_wh = jax.random.uniform(k3, (B, NA, 2), minval=0.1, maxval=1.0)
    gt_bbox = jnp.concatenate([gt_xy, gt_wh], axis=-1).astype(jnp.float32)
    gt_labels = jax.random.randint(k4, (B, NA), 0, C, dtype=jnp.int32)

    # deterministic "anchors" parameter: [1, 4, NA], xywh with positive w/h
    anc_xy = jax.random.uniform(k5, (2, NA), minval=0.0, maxval=1.0)
    anc_wh = jax.random.uniform(k5, (2, NA), minval=0.1, maxval=1.0)
    anchors = jnp.concatenate([anc_xy, anc_wh], axis=0)[None].astype(jnp.float32)

    # alpha per class (typical SSD focal-loss style weighting), deterministic
    alpha = jnp.array([0.01] + [1.0] * (C - 1), dtype=jnp.float32)

    # Small tile + 2 splits so the tiny demo exercises anchor padding, the
    # cross-tile accumulation and the per-split ("parallel") accumulators.
    total, to_log = focal_loss_forward(
        bbox_delta, confs, gt_bbox, gt_labels,
        anchors, alpha, gamma, scale_xy, scale_wh,
        tile_na=256, num_splits=2)
    total = jax.block_until_ready(total)

    ref = jax.block_until_ready(_reference_jax(
        bbox_delta, confs, gt_bbox, gt_labels,
        anchors, alpha, gamma, scale_xy, scale_wh))

    assert jnp.allclose(total, ref, rtol=1e-4, atol=1e-4), (total, ref)
    print("KERNEL_OK")
</pallas_src>

<mosaic_0001>
module attributes {stable_mosaic.version = 11 : i64} {
  func.func @_focal_loss_kernel(%arg0: i32, %arg1: i32, %arg2: i32, %arg3: memref<1x6x256xf32, #tpu.memory_space<vmem>>, %arg4: memref<1x4x256xf32, #tpu.memory_space<vmem>>, %arg5: memref<1x4x256xf32, #tpu.memory_space<vmem>>, %arg6: memref<1x1x256xi32, #tpu.memory_space<vmem>>, %arg7: memref<1x4x256xf32, #tpu.memory_space<vmem>>, %arg8: memref<6x256xf32, #tpu.memory_space<vmem>>, %arg9: memref<1x1x8x256xf32, #tpu.memory_space<vmem>>) attributes {dimension_semantics = [#tpu.dimension_semantics<parallel>, #tpu.dimension_semantics<parallel>, #tpu.dimension_semantics<arbitrary>], iteration_bounds = array<i64: 2, 2, 2>, scalar_prefetch = 0 : i64, scratch_operands = 0 : i64, tpu.core_type = #tpu.core_type<tc>, window_params = [{transform_indices = @transform_0, window_bounds = array<i64: 1, 6, 256>}, {transform_indices = @transform_1, window_bounds = array<i64: 1, 4, 256>}, {transform_indices = @transform_2, window_bounds = array<i64: 1, 4, 256>}, {transform_indices = @transform_3, window_bounds = array<i64: 1, 1, 256>}, {transform_indices = @transform_4, window_bounds = array<i64: 1, 4, 256>}, {pipeline_mode = #tpu.pipeline_mode<synchronous>, transform_indices = @transform_5, window_bounds = array<i64: 6, 256>}, {transform_indices = @transform_6, window_bounds = array<i64: 1, 1, 8, 256>}]} {
    %c0_i32 = arith.constant 0 : i32
    %0 = arith.cmpi eq, %arg2, %c0_i32 : i32
    %1 = arith.extui %0 : i1 to i32
    %c0_i32_0 = arith.constant 0 : i32
    %2 = arith.cmpi ne, %1, %c0_i32_0 : i32
    scf.if %2 {
      %cst_57 = arith.constant 0.000000e+00 : f32
      %103 = vector.broadcast %cst_57 : f32 to vector<8x256xf32>
      %c0_58 = arith.constant 0 : index
      %c0_59 = arith.constant 0 : index
      %c0_60 = arith.constant 0 : index
      %c0_61 = arith.constant 0 : index
      %104 = vector.load %arg9[%c0_58, %c0_59, %c0_60, %c0_61] : memref<1x1x8x256xf32, #tpu.memory_space<vmem>>, vector<1x1x8x256xf32>
      %105 = vector.shape_cast %104 : vector<1x1x8x256xf32> to vector<8x256xf32>
      %106 = vector.shape_cast %103 : vector<8x256xf32> to vector<1x1x8x256xf32>
      tpu.vector_store %arg9[%c0_58, %c0_59, %c0_60, %c0_61], %106 {strides = array<i32>} : memref<1x1x8x256xf32, #tpu.memory_space<vmem>>, vector<1x1x8x256xf32>,
    } else {
    }
    %c0 = arith.constant 0 : index
    %c0_1 = arith.constant 0 : index
    %c0_2 = arith.constant 0 : index
    %3 = vector.load %arg3[%c0, %c0_1, %c0_2] : memref<1x6x256xf32, #tpu.memory_space<vmem>>, vector<1x6x256xf32>
    %4 = vector.shape_cast %3 : vector<1x6x256xf32> to vector<6x256xf32>
    %c0_3 = arith.constant 0 : index
    %c0_4 = arith.constant 0 : index
    %c0_5 = arith.constant 0 : index
    %5 = vector.load %arg6[%c0_3, %c0_4, %c0_5] : memref<1x1x256xi32, #tpu.memory_space<vmem>>, vector<1x1x256xi32>
    %6 = vector.shape_cast %5 : vector<1x1x256xi32> to vector<1x256xi32>
    %7 = tpu.iota {dimensions = array<i32: 0>} : vector<6x256xi32>
    %8 = vector.broadcast %6 : vector<1x256xi32> to vector<6x256xi32>
    %9 = arith.cmpi eq, %7, %8 : vector<6x256xi32>
    %cst = arith.constant dense<0xFF800000> : vector<256xf32>
    %10 = vector.multi_reduction <maximumf>, %4, %cst [0] : vector<6x256xf32> to vector<256xf32>
    %11 = vector.shape_cast %10 : vector<256xf32> to vector<1x256xf32>
    %12 = vector.broadcast %11 : vector<1x256xf32> to vector<6x256xf32>
    %13 = arith.subf %4, %12 : vector<6x256xf32>
    %14 = math.exp %13 : vector<6x256xf32>
    %cst_6 = arith.constant dense<0.000000e+00> : vector<256xf32>
    %15 = vector.multi_reduction <add>, %14, %cst_6 [0] : vector<6x256xf32> to vector<256xf32>
    %16 = vector.shape_cast %15 : vector<256xf32> to vector<1x256xf32>
    %17 = math.log %16 : vector<1x256xf32>
    %cst_7 = arith.constant 0.000000e+00 : f32
    %18 = vector.broadcast %cst_7 : f32 to vector<6x256xf32>
    %19 = arith.select %9, %13, %18 : vector<6x256xi1>, vector<6x256xf32>
    %cst_8 = arith.constant dense<0.000000e+00> : vector<256xf32>
    %20 = vector.multi_reduction <add>, %19, %cst_8 [0] : vector<6x256xf32> to vector<256xf32>
    %21 = vector.shape_cast %20 : vector<256xf32> to vector<1x256xf32>
    %c0_9 = arith.constant 0 : index
    %c0_10 = arith.constant 0 : index
    %22 = vector.load %arg8[%c0_9, %c0_10] : memref<6x256xf32, #tpu.memory_space<vmem>>, vector<6x256xf32>
    %cst_11 = arith.constant 0.000000e+00 : f32
    %23 = vector.broadcast %cst_11 : f32 to vector<6x256xf32>
    %24 = arith.select %9, %22, %23 : vector<6x256xi1>, vector<6x256xf32>
    %cst_12 = arith.constant dense<0.000000e+00> : vector<256xf32>
    %25 = vector.multi_reduction <add>, %24, %cst_12 [0] : vector<6x256xf32> to vector<256xf32>
    %26 = vector.shape_cast %25 : vector<256xf32> to vector<1x256xf32>
    %27 = arith.subf %21, %17 : vector<1x256xf32>
    %28 = math.exp %27 : vector<1x256xf32>
    %cst_13 = arith.constant 1.000000e+00 : f32
    %29 = vector.broadcast %cst_13 : f32 to vector<1x256xf32>
    %30 = arith.subf %29, %28 : vector<1x256xf32>
    %31 = arith.mulf %30, %30 : vector<1x256xf32>
    %32 = arith.mulf %26, %31 : vector<1x256xf32>
    %33 = arith.mulf %32, %27 : vector<1x256xf32>
    %cst_14 = arith.constant 0.000000e+00 : f32
    %34 = vector.broadcast %cst_14 : f32 to vector<1x256xf32>
    %35 = arith.subf %34, %33 : vector<1x256xf32>
    %c0_15 = arith.constant 0 : index
    %c0_16 = arith.constant 0 : index
    %c0_17 = arith.constant 0 : index
    %36 = vector.load %arg5[%c0_15, %c0_16, %c0_17] : memref<1x4x256xf32, #tpu.memory_space<vmem>>, vector<1x4x256xf32>
    %37 = vector.shape_cast %36 : vector<1x4x256xf32> to vector<4x256xf32>
    %c0_18 = arith.constant 0 : index
    %c0_19 = arith.constant 0 : index
    %c0_20 = arith.constant 0 : index
    %38 = vector.load %arg7[%c0_18, %c0_19, %c0_20] : memref<1x4x256xf32, #tpu.memory_space<vmem>>, vector<1x4x256xf32>
    %39 = vector.shape_cast %38 : vector<1x4x256xf32> to vector<4x256xf32>
    %c0_21 = arith.constant 0 : index
    %c0_22 = arith.constant 0 : index
    %c0_23 = arith.constant 0 : index
    %40 = vector.load %arg4[%c0_21, %c0_22, %c0_23] : memref<1x4x256xf32, #tpu.memory_space<vmem>>, vector<1x4x256xf32>
    %41 = vector.shape_cast %40 : vector<1x4x256xf32> to vector<4x256xf32>
    %42 = vector.extract_strided_slice %39 {offsets = [2, 0], sizes = [2, 256], strides = [1, 1]} : vector<4x256xf32> to vector<2x256xf32>
    %43 = vector.extract_strided_slice %37 {offsets = [0, 0], sizes = [2, 256], strides = [1, 1]} : vector<4x256xf32> to vector<2x256xf32>
    %44 = vector.extract_strided_slice %39 {offsets = [0, 0], sizes = [2, 256], strides = [1, 1]} : vector<4x256xf32> to vector<2x256xf32>
    %45 = arith.subf %43, %44 : vector<2x256xf32>
    %cst_24 = arith.constant 1.000000e+01 : f32
    %46 = vector.broadcast %cst_24 : f32 to vector<2x256xf32>
    %47 = arith.mulf %46, %45 : vector<2x256xf32>
    %48 = arith.divf %47, %42 : vector<2x256xf32>
    %49 = vector.extract_strided_slice %37 {offsets = [2, 0], sizes = [2, 256], strides = [1, 1]} : vector<4x256xf32> to vector<2x256xf32>
    %50 = arith.divf %49, %42 : vector<2x256xf32>
    %51 = math.log %50 : vector<2x256xf32>
    %cst_25 = arith.constant 5.000000e+00 : f32
    %52 = vector.broadcast %cst_25 : f32 to vector<2x256xf32>
    %53 = arith.mulf %52, %51 : vector<2x256xf32>
    %54 = vector.extract_strided_slice %41 {offsets = [0, 0], sizes = [2, 256], strides = [1, 1]} : vector<4x256xf32> to vector<2x256xf32>
    %55 = arith.subf %54, %48 : vector<2x256xf32>
    %56 = vector.extract_strided_slice %41 {offsets = [2, 0], sizes = [2, 256], strides = [1, 1]} : vector<4x256xf32> to vector<2x256xf32>
    %57 = arith.subf %56, %53 : vector<2x256xf32>
    %58 = math.absf %55 : vector<2x256xf32>
    %59 = math.absf %57 : vector<2x256xf32>
    %cst_26 = arith.constant 1.000000e+00 : f32
    %60 = vector.broadcast %cst_26 : f32 to vector<2x256xf32>
    %61 = arith.cmpf olt, %58, %60 : vector<2x256xf32>
    %cst_27 = arith.constant 5.000000e-01 : f32
    %62 = vector.broadcast %cst_27 : f32 to vector<2x256xf32>
    %63 = arith.mulf %62, %55 : vector<2x256xf32>
    %64 = arith.mulf %63, %55 : vector<2x256xf32>
    %cst_28 = arith.constant 5.000000e-01 : f32
    %65 = vector.broadcast %cst_28 : f32 to vector<2x256xf32>
    %66 = arith.subf %58, %65 : vector<2x256xf32>
    %67 = arith.select %61, %64, %66 : vector<2x256xi1>, vector<2x256xf32>
    %cst_29 = arith.constant 1.000000e+00 : f32
    %68 = vector.broadcast %cst_29 : f32 to vector<2x256xf32>
    %69 = arith.cmpf olt, %59, %68 : vector<2x256xf32>
    %cst_30 = arith.constant 5.000000e-01 : f32
    %70 = vector.broadcast %cst_30 : f32 to vector<2x256xf32>
    %71 = arith.mulf %70, %57 : vector<2x256xf32>
    %72 = arith.mulf %71, %57 : vector<2x256xf32>
    %cst_31 = arith.constant 5.000000e-01 : f32
    %73 = vector.broadcast %cst_31 : f32 to vector<2x256xf32>
    %74 = arith.subf %59, %73 : vector<2x256xf32>
    %75 = arith.select %69, %72, %74 : vector<2x256xi1>, vector<2x256xf32>
    %76 = arith.addf %67, %75 : vector<2x256xf32>
    %c0_i32_32 = arith.constant 0 : i32
    %77 = vector.broadcast %c0_i32_32 : i32 to vector<1x256xi32>
    %78 = arith.cmpi sgt, %6, %77 : vector<1x256xi32>
    %cst_33 = arith.constant dense<0.000000e+00> : vector<256xf32>
    %79 = vector.multi_reduction <add>, %76, %cst_33 [0] : vector<2x256xf32> to vector<256xf32>
    %80 = vector.shape_cast %79 : vector<256xf32> to vector<1x256xf32>
    %cst_34 = arith.constant 0.000000e+00 : f32
    %81 = vector.broadcast %cst_34 : f32 to vector<1x256xf32>
    %82 = arith.select %78, %80, %81 : vector<1x256xi1>, vector<1x256xf32>
    %83 = arith.extui %78 : vector<1x256xi1> to vector<1x256xi32>
    %84 = arith.sitofp %83 : vector<1x256xi32> to vector<1x256xf32>
    %c0_35 = arith.constant 0 : index
    %c0_36 = arith.constant 0 : index
    %c0_37 = arith.constant 0 : index
    %c0_38 = arith.constant 0 : index
    %85 = vector.load %arg9[%c0_35, %c0_36, %c0_37, %c0_38] : memref<1x1x8x256xf32, #tpu.memory_space<vmem>>, vector<1x1x1x256xf32>
    %86 = vector.shape_cast %85 : vector<1x1x1x256xf32> to vector<1x256xf32>
    %87 = arith.addf %86, %35 : vector<1x256xf32>
    %c0_39 = arith.constant 0 : index
    %c0_40 = arith.constant 0 : index
    %c0_41 = arith.constant 0 : index
    %c0_42 = arith.constant 0 : index
    %88 = vector.load %arg9[%c0_39, %c0_40, %c0_41, %c0_42] : memref<1x1x8x256xf32, #tpu.memory_space<vmem>>, vector<1x1x1x256xf32>
    %89 = vector.shape_cast %88 : vector<1x1x1x256xf32> to vector<1x256xf32>
    %90 = vector.shape_cast %87 : vector<1x256xf32> to vector<1x1x1x256xf32>
    tpu.vector_store %arg9[%c0_39, %c0_40, %c0_41, %c0_42], %90 {strides = array<i32>} : memref<1x1x8x256xf32, #tpu.memory_space<vmem>>, vector<1x1x1x256xf32>,
    %c0_43 = arith.constant 0 : index
    %c0_44 = arith.constant 0 : index
    %c1 = arith.constant 1 : index
    %c0_45 = arith.constant 0 : index
    %91 = vector.load %arg9[%c0_43, %c0_44, %c1, %c0_45] : memref<1x1x8x256xf32, #tpu.memory_space<vmem>>, vector<1x1x1x256xf32>
    %92 = vector.shape_cast %91 : vector<1x1x1x256xf32> to vector<1x256xf32>
    %93 = arith.addf %92, %82 : vector<1x256xf32>
    %c0_46 = arith.constant 0 : index
    %c0_47 = arith.constant 0 : index
    %c1_48 = arith.constant 1 : index
    %c0_49 = arith.constant 0 : index
    %94 = vector.load %arg9[%c0_46, %c0_47, %c1_48, %c0_49] : memref<1x1x8x256xf32, #tpu.memory_space<vmem>>, vector<1x1x1x256xf32>
    %95 = vector.shape_cast %94 : vector<1x1x1x256xf32> to vector<1x256xf32>
    %96 = vector.shape_cast %93 : vector<1x256xf32> to vector<1x1x1x256xf32>
    tpu.vector_store %arg9[%c0_46, %c0_47, %c1_48, %c0_49], %96 {strides = array<i32>} : memref<1x1x8x256xf32, #tpu.memory_space<vmem>>, vector<1x1x1x256xf32>,
    %c0_50 = arith.constant 0 : index
    %c0_51 = arith.constant 0 : index
    %c2 = arith.constant 2 : index
    %c0_52 = arith.constant 0 : index
    %97 = vector.load %arg9[%c0_50, %c0_51, %c2, %c0_52] : memref<1x1x8x256xf32, #tpu.memory_space<vmem>>, vector<1x1x1x256xf32>
    %98 = vector.shape_cast %97 : vector<1x1x1x256xf32> to vector<1x256xf32>
    %99 = arith.addf %98, %84 : vector<1x256xf32>
    %c0_53 = arith.constant 0 : index
    %c0_54 = arith.constant 0 : index
    %c2_55 = arith.constant 2 : index
    %c0_56 = arith.constant 0 : index
    %100 = vector.load %arg9[%c0_53, %c0_54, %c2_55, %c0_56] : memref<1x1x8x256xf32, #tpu.memory_space<vmem>>, vector<1x1x1x256xf32>
    %101 = vector.shape_cast %100 : vector<1x1x1x256xf32> to vector<1x256xf32>
    %102 = vector.shape_cast %99 : vector<1x256xf32> to vector<1x1x1x256xf32>
    tpu.vector_store %arg9[%c0_53, %c0_54, %c2_55, %c0_56], %102 {strides = array<i32>} : memref<1x1x8x256xf32, #tpu.memory_space<vmem>>, vector<1x1x1x256xf32>,
    return
  }
  func.func @transform_0(%arg0: i32, %arg1: i32, %arg2: i32) -> (i32, i32, i32) {
    %c2_i32 = arith.constant 2 : i32
    %0 = arith.muli %arg1, %c2_i32 : i32
    %1 = arith.addi %0, %arg2 : i32
    %c0_i32 = arith.constant 0 : i32
    %c0_i32_0 = arith.constant 0 : i32
    return %arg0, %c0_i32, %1 : i32, i32, i32
  }
  func.func @transform_1(%arg0: i32, %arg1: i32, %arg2: i32) -> (i32, i32, i32) {
    %c2_i32 = arith.constant 2 : i32
    %0 = arith.muli %arg1, %c2_i32 : i32
    %1 = arith.addi %0, %arg2 : i32
    %c0_i32 = arith.constant 0 : i32
    %c0_i32_0 = arith.constant 0 : i32
    return %arg0, %c0_i32, %1 : i32, i32, i32
  }
  func.func @transform_2(%arg0: i32, %arg1: i32, %arg2: i32) -> (i32, i32, i32) {
    %c2_i32 = arith.constant 2 : i32
    %0 = arith.muli %arg1, %c2_i32 : i32
    %1 = arith.addi %0, %arg2 : i32
    %c0_i32 = arith.constant 0 : i32
    %c0_i32_0 = arith.constant 0 : i32
    return %arg0, %c0_i32, %1 : i32, i32, i32
  }
  func.func @transform_3(%arg0: i32, %arg1: i32, %arg2: i32) -> (i32, i32, i32) {
    %c2_i32 = arith.constant 2 : i32
    %0 = arith.muli %arg1, %c2_i32 : i32
    %1 = arith.addi %0, %arg2 : i32
    %c0_i32 = arith.constant 0 : i32
    %c0_i32_0 = arith.constant 0 : i32
    return %arg0, %c0_i32, %1 : i32, i32, i32
  }
  func.func @transform_4(%arg0: i32, %arg1: i32, %arg2: i32) -> (i32, i32, i32) {
    %c2_i32 = arith.constant 2 : i32
    %0 = arith.muli %arg1, %c2_i32 : i32
    %1 = arith.addi %0, %arg2 : i32
    %c0_i32 = arith.constant 0 : i32
    %c0_i32_0 = arith.constant 0 : i32
    %c0_i32_1 = arith.constant 0 : i32
    return %c0_i32, %c0_i32_0, %1 : i32, i32, i32
  }
  func.func @transform_5(%arg0: i32, %arg1: i32, %arg2: i32) -> (i32, i32) {
    %c0_i32 = arith.constant 0 : i32
    %c0_i32_0 = arith.constant 0 : i32
    %c0_i32_1 = arith.constant 0 : i32
    return %c0_i32, %c0_i32_0 : i32, i32
  }
  func.func @transform_6(%arg0: i32, %arg1: i32, %arg2: i32) -> (i32, i32, i32, i32) {
    %c0_i32 = arith.constant 0 : i32
    %c0_i32_0 = arith.constant 0 : i32
    %c0_i32_1 = arith.constant 0 : i32
    return %arg0, %arg1, %c0_i32, %c0_i32_0 : i32, i32, i32, i32
  }
}

</mosaic_0001>

<bundles_post_ra>
// kernel: tpu_custom_call.1
= control target key start
LH: loop header
LB: loop body
LE: loop exit
PB: predicated region body
PF: predicated region fallthrough
CT: control target
= control target key end

     0   :  { %s1437_s0 = inlined_call_operand.vmem [shape: f32[2,6,1024], index: 0, kind: input, shape index: {}]   ;;  %s1438_s1 = inlined_call_operand.vmem [shape: f32[2,4,1024], index: 1, kind: input, shape index: {}]   ;;  %s1439_s2 = inlined_call_operand.vmem [shape: f32[2,4,1024], index: 2, kind: input, shape index: {}]   ;;  %s1440_s3 = inlined_call_operand.vmem [shape: s32[2,1,1024], index: 3, kind: input, shape index: {}]   ;;  %s1441_s4 = inlined_call_operand.vmem [shape: f32[1,4,1024], index: 4, kind: input, shape index: {}]   ;;  %s1442_s5 = inlined_call_operand.vmem [shape: f32[6,256], index: 5, kind: input, shape index: {}]   ;;  %s1443_s6 = inlined_call_operand.hbm [shape: f32[2,2,8,256], index: 6, kind: output, shape index: {}]  }
   0x1   :  { %1457 = sst [smem:[#allocation16_spill]] %s1443_s6 }
   0x2   :  { %11 = vsyncpa [#allocation3], 0 }
   0x3   :  { %13 = vsyncpa [#allocation3 + $0x1], 0  ;;  %s1179_s21 = smov 0   ;;  %s1181_s22 = smov 0  }
   0x4   :  { %s1183_s23 = smov 0   ;;  %s1185_s24 = smov 0  }
   0x5   :  { %s1187_s25 = smov 0   ;;  %s1189_s26 = smov 0  }
   0x6   :  { %s1191_s27 = smov 0   ;;  %s1193_s28 = smov 0  }
   0x7   :  { %s1195_s29 = smov 0   ;;  %s1197_s30 = smov 0  }
   0x8 LB: > { %1458 = sst [smem:[#allocation5_spill]] %s1102_s21  ;;  %s870_s7 = sadd.s32 4294967295, %s1138_s30   ;;  %s1138_s30 = sphi %s1197_s30, %s19_s30   ;;  %s1134_s29 = sphi %s1195_s29, %s1488_s29   ;;  %s1130_s28 = sphi %s1193_s28, %s1487_s28   ;;  %s1126_s27 = sphi %s1191_s27, %s1486_s27   ;;  %s1122_s26 = sphi %s1189_s26, %s1485_s26   ;;  %s1118_s25 = sphi %s1187_s25, %s1484_s25   ;;  %s1114_s24 = sphi %s1185_s24, %s1483_s24   ;;  %s1110_s23 = sphi %s1183_s23, %s1482_s23   ;;  %s1106_s22 = sphi %s1181_s22, %s1490_s22   ;;  %s1102_s21 = sphi %s1179_s21, %s1489_s21  }
   0x9   : > { %1459 = sst [smem:[#allocation6_spill]] %s1110_s23  ;;  %s871_s8 = sadd.s32 4294967294, %s1138_s30  }
   0xa   : > { %1460 = sst [smem:[#allocation7_spill]] %s1126_s27  ;;  %s31_s9 = sadd.s32 1, %s1126_s27 }
   0xb   : > { %1461 = sst [smem:[#allocation8_spill]] %s1130_s28  ;;  %p32_p0 = scmp.ge.s32.totalorder %s31_s9, 2 }
   0xc   : > { %1462 = sst [smem:[#allocation9_spill]] %s1134_s29  ;;  %s34_s10 = sadd.s32 1, %s1130_s28 }
   0xd   : > { %1463 = sst [smem:[#allocation10_spill]] %s1138_s30  ;;  %s38_s11 = sadd.s32 1, %s1134_s29 }
   0xe   : > { %p236_p1 = scmp.ne.s32.totalorder %s1110_s23, %s1106_s22  ;;  %s1492_s9 = smov (%p32_p0, %s31_s9), 0 }
   0xf   : > { %1464 = sst [smem:[#allocation11_spill]] %s1492_s9  ;;  %s1494_s10 = smov (!%p32_p0, %s34_s10), %s1130_s28 }
  0x10   : > { %p237_p2 = scmp.eq.s32.totalorder %s870_s7, 7  ;;  %p242_p3 = scmp.ne.s32.totalorder %s1106_s22, %s1102_s21 }
  0x11   : > { %p36_p4 = scmp.ge.s32.totalorder %s1494_s10, 2  ;;  %p243_p5 = scmp.eq.s32.totalorder %s871_s8, 7 }
  0x12   : > { %p1241_p6 = por %p237_p2, %p236_p1  ;;  %p884_p8 = scmp.ge.s32.totalorder %s1138_s30, 1 }
  0x13   : > { %s1496_s10 = smov (%p36_p4, %s1494_s10), 0  ;;  %s1498_s11 = smov (!%p36_p4, %s38_s11), %s1134_s29 }
  0x14   : > { %1466 = sst [smem:[#allocation12_spill]] %s1496_s10  ;;  %p1248_p7 = por %p243_p5, %p242_p3 }
  0x15   : > { %p40_p9 = scmp.ge.s32.totalorder %s1498_s11, 2  ;;  %p344_p10 = scmp.lt.s32.totalorder %s1138_s30, 9 }
  0x16   : > { %s1467_s13 = scalar_select %p1248_p7, 1, 0 }
  0x17   : > { %s222_s14 = ssub.s32 %s1130_s28, %s1496_s10  ;;  %s1500_s11 = smov (%p40_p9, %s1498_s11), 0 }
  0x18   : > { %1468 = sst [smem:[#allocation13_spill]] %s1467_s13  ;;  %p345_p11 = pnand %p884_p8, %p344_p10 }
  0x19   : > { %1469 = sst [smem:[#allocation14_spill]] %s1500_s11  ;;  %s221_s15 = ssub.s32 %s1134_s29, %s1500_s11 }
  0x1a   : > { %s223_s16 = sor.u32 %s222_s14, %s221_s15  ;;  %s226_s17 = sadd.s32 1, %s1110_s23 }
  0x1b   : > { %p224_p12 = scmp.eq.s32.totalorder %s223_s16, 0  ;;  %348 = sbr.rel (%p345_p11) target bundleno = 145 (0x91), region = 44 }
  0x1c   : > { %s1450_s19 = sand.u32 (!%p345_p11), 1, %s1106_s22   ;;  %s1451_s20 = sshll.u32 (!%p345_p11), %s1118_s25, 1 }
  0x1d   : > { %s1262_s18 = scalar_select %p224_p12, %s1110_s23, %s226_s17  }
  0x1e   : > { %s885_s7 = sshll.u32 (!%p345_p11), %s1450_s19, 4  ;;  %s420_s8 = sadd.s32 (!%p345_p11), %s1114_s24, %s1451_s20 }
  0x1f   : > { %1470 = sst [smem:[#allocation15_spill]] %s1262_s18  ;;  %s887_s11 = sshll.u32 (!%p345_p11), %s420_s8, 1 }
  0x20   : > { %p422_p13 = scmp.lt.s32.totalorder (!%p345_p11), %s1122_s26, 1  ;;  %p424_p0 = scmp.lt.s32.totalorder (!%p345_p11), %s887_s11, 7 }
  0x21   : > { %s1292_s28 = scalar_lea.vmem (!%p345_p11), [#allocation2], %s885_s7  ;;  %p904_p1 = scmp.ne.s32.totalorder (!%p345_p11), %s1114_s24, 0 }
  0x22   : > { %s423_s14 = scalar_select %p422_p13, %s1122_s26, 1 }
  0x23   : > { %s1502_s11 = smov (!%p424_p0, %s887_s11), 7  ;;  %487 = sbr.rel (%p904_p1) target bundleno = 42 (0x2a), region = 48 }
  0x24   : > { %s888_s15 = sshll.u32 %s423_s14, 3  ;;  %s903_s17 = sshll.u32 %s1502_s11, 2  ;;  %v1140_v0 = vmov (!%p904_p1), 0.0  }
  0x25   : > { %s427_s16 = sadd.s32 %s888_s15, %s1502_s11  ;;  %s480_s6 = scalar_lea.vmem %s1441_s4, %s903_s17  ;;  %488 = vst [vmem:[%s1292_s28] sm:$0xff] (!%p904_p1), %v1140_v0  ;;  %489 = vst [vmem:[%s1292_s28 + $0x8] sm:$0xff] (!%p904_p1), %v1140_v0 }
  0x26   : > { %s889_s10 = sshll.u32 %s427_s16, 3  ;;  %s893_s9 = sshll.u32 %s427_s16, 2 }
  0x27   : > { %s429_s27 = scalar_lea.vmem %s1437_s0, %s889_s10  ;;  %s1279_s19 = scalar_lea.vmem %s1438_s1, %s893_s9 }
  0x28   : > { %s1284_s13 = scalar_lea.vmem %s1439_s2, %s893_s9  ;;  %s470_s11 = scalar_lea.vmem %s1440_s3, %s427_s16 }
  0x2a PF: > { %v490_v1 = vld [vmem:[%s429_s27] sm:$0x3f]  ;;  %v491_v2 = vld [vmem:[%s429_s27 + $0x8] sm:$0x3f]  ;;  %vm505_vm0 = vcmask 1045504   ;;  %v493_v11 = vlaneseq  ;;  %v1141_v19 = vmov 0.0  }
  0x2b   : > { %v506_v3 = vsel %vm505_vm0, %v490_v1, -inf  ;;  %v513_v4 = vsel %vm505_vm0, %v491_v2, -inf  ;;  %v595_v5 = vld [vmem:[%s480_s6] sm:$0xff]  ;;  %vm633_vm7 = vcmask 1041408   ;;  %s916_s27 = sshll.u32 %s1122_s26, 2  ;;  %s1475_s29 = sshll.u32 %s1118_s25, 1 }
  0x2c   : > { %v507_v6 = vrot.slane %v506_v3, 4  ;;  %v514_v7 = vrot.slane %v513_v4, 4  ;;  %1010 = vrcp.f32 %v595_v5  ;;  %v1299_v10 = vld [vmem:[%s470_s11] sm:$0x3]  ;;  %v905_v14 = vrot.slane %v595_v5, 10  ;;  %s718_s30 = sadd.s32 %s916_s27, %s1475_s29  ;;  %s722_s10 = sshll.u32 %s1292_s28, 4  ;;  %s1375_s10 = int_to_ptr.vmem [resolvable:$true] %s722_s10 }
  0x2d   : > { %vm629_vm1 = vcmp.gt.s32.totalorder %v1299_v10, 0  ;;  %v912_v17 = vld [vmem:[%s1292_s28 + $0x2] ss:$8 sm:$0x3]  ;;  %v1303_v18 = vshrl.u32 %v493_v11, 7  ;;  %vm1307_vm2 = vcmp.lt.s32.totalorder %v493_v11, 256 }
  0x2e   : > { %v508_v8 = vmax.f32 %v506_v3, %v507_v6  ;;  %v515_v9 = vmax.f32 %v513_v4, %v514_v7  ;;  %v909_v20 = vsel %vm629_vm1, 1.0, %v1141_v19  ;;  %1012 = vrcp.f32 %v905_v14  ;;  %v594_v28 = vld [vmem:[%s1284_s13] sm:$0xff]  ;;  %s917_s9 = sshll.u32 %s718_s30, 7  ;;  %s1477_s25 = sand.u32 1, %s1106_s22  }
  0x2f   : > { %v702_v24 = vadd.f32 %v912_v17, %v909_v20  ;;  %v497_v27 = vsub.s32 0, %v1303_v18  ;;  %v501_v32 = vsub.s32 1, %v1303_v18  ;;  %v597_v35 = vsub.f32 %v594_v28, %v595_v5  ;;  %v596_v45 = vld [vmem:[%s1279_s19] sm:$0xff]  ;;  %s1476_s19 = sld [smem:[#allocation16_spill]]  ;;  %s706_s26 = scalar_lea.sflag [#allocation3], %s1477_s25 }
  0x30   : > { %v509_v12 = vrot.slane %v508_v8, 2  ;;  %v516_v13 = vrot.slane %v515_v9, 2  ;;  %s1028_s7 = scalar_lea.vmem %s1375_s10, 256  ;;  %s1143_s16 = smov [#allocation2]  }
  0x31   : > { %913 = vst.msk [vmem:[%s1292_s28 + $0x2] ss:$8 sm:$0x3] %vm1307_vm2, %v702_v24  ;;  %v1318_v37 = vrot.slane %v1299_v10, %v497_v27  ;;  %v1321_v38 = vrot.slane %v1299_v10, %v501_v32  ;;  %v598_v39 = vmul.f32 10.0, %v597_v35  ;;  %p1029_p2 = scmp.ne.s32.totalorder %s1375_s10, %s1028_s7  ;;  %s1032_s17 = sshll.u32 %s1143_s16, 4  ;;  %s1033_s17 = int_to_ptr.vmem [resolvable:$false] %s1032_s17 }
  0x32   : > { %v510_v15 = vmax.f32 %v508_v8, %v509_v12  ;;  %v517_v16 = vmax.f32 %v515_v9, %v516_v13  ;;  %v910_v13 = vld [vmem:[%s1292_s28 + $0x1] ss:$8 sm:$0x3]  ;;  %s1034_s8 = scalar_lea.vmem %s1033_s17, 512  ;;  %p1035_p5 = scmp.lt.s32.totalorder %s1375_s10, %s1033_s17 }
  0x33   : > { %vm503_vm3 = vcmp.eq.s32.totalorder %v1303_v18, %v1318_v37  ;;  %vm504_vm4 = vcmp.eq.s32.totalorder %v1303_v18, %v1321_v38  ;;  %v1142_v37 = vmov 1966171168   ;;  %p1030_p3 = pnand %p1029_p2, %p1241_p6  ;;  %p1036_p8 = scmp.lt.s32.totalorder %s1034_s8, %s1028_s7 }
  0x34   : > { %v511_v21 = vrot.slane %v510_v15, 1  ;;  %v518_v22 = vrot.slane %v517_v16, 1 }
  0x35   : > { %s1373_s20 = scalar_lea.hbm %s1476_s19, %s917_s9  ;;  %p1031_p4 = pneg %p1030_p3 }
  0x36   : > { %v512_v25 = vmax.f32 %v510_v15, %v511_v21  ;;  %v519_v26 = vmax.f32 %v517_v16, %v518_v22  ;;  %v1011_v29 = vpop.eup %1010  ;;  %v560_v21 = vld [vmem:[%s1442_s5] sm:$0x3f]  ;;  %p1037_p9 = por %p1036_p8, %p1035_p5 }
  0x37   : > { %v606_v36 = vmul.f32 %v1011_v29, %v594_v28  ;;  %v562_v29 = vsel %vm503_vm3, %v560_v21, 0.0 }
  0x38   : > { %v520_v30 = vsub.f32 %v490_v1, %v512_v25  ;;  %v521_v31 = vsub.f32 %v491_v2, %v519_v26  ;;  %v1013_v40 = vpop.eup %1012  ;;  %v561_v25 = vld [vmem:[%s1442_s5 + $0x8] sm:$0x3f]  ;;  %v564_v35 = vsel %vm505_vm0, %v562_v29, 0.0  ;;  %p1038_p10 = pnand %p1037_p9, %p1031_p4 }
  0x39   : > { %v604_v42 = vmul.f32 %v1013_v40, %v598_v39 }
  0x3a   : > { %v522_v33 = vmul.f32 1.442695, %v520_v30  ;;  %v524_v34 = vmul.f32 1.442695, %v521_v31  ;;  %v544_v41 = vsel %vm503_vm3, %v520_v30, 0.0  ;;  %v545_v43 = vsel %vm504_vm4, %v521_v31, 0.0 }
  0x3b   : > { %v546_v44 = vsel %vm505_vm0, %v544_v41, 0.0  ;;  %v610_v47 = vsub.f32 %v596_v45, %v604_v42  ;;  %v553_v50 = vsel %vm505_vm0, %v545_v43, 0.0  ;;  %v563_v31 = vsel %vm504_vm4, %v561_v25, 0.0 }
  0x3c   : > { %1014 = vpow2.f32 %v522_v33  ;;  %v547_v54 = vrot.slane %v546_v44, 4  ;;  %v554_v58 = vrot.slane %v553_v50, 4  ;;  %v571_v40 = vsel %vm505_vm0, %v563_v31, 0.0 }
  0x3d   : > { %1016 = vpow2.f32 %v524_v34  ;;  %v615_v59 = vmul.f32 0.5, %v610_v47  ;;  %v612_v62 = vand.u32 2147483647, %v610_v47 }
  0x3e   : > { %1018 = vlog2.f32 %v606_v36  ;;  %v548_v0 = vadd.f32 %v547_v54, %v546_v44  ;;  %v555_v4 = vadd.f32 %v554_v58, %v553_v50  ;;  %v565_v44 = vrot.slane %v564_v35, 4 }
  0x3f   : > { %v616_v5 = vmul.f32 %v615_v59, %v610_v47  ;;  %v906_v8 = vadd.f32 -0.5, %v612_v62  ;;  %vm1338_vm5 = vcmp.lt.f32.partialorder %v612_v62, 1.0  ;;  %v572_v47 = vrot.slane %v571_v40, 4 }
  0x40   : > { %v549_v12 = vrot.slane %v548_v0, 2  ;;  %v556_v19 = vrot.slane %v555_v4, 2 }
  0x41   : > { %v618_v22 = vsel %vm1338_vm5, %v616_v5, %v906_v8  ;;  %v573_v58 = vadd.f32 %v572_v47, %v571_v40 }
  0x42   : > { %v550_v27 = vadd.f32 %v549_v12, %v548_v0  ;;  %v557_v28 = vadd.f32 %v556_v19, %v555_v4 }
  0x43   : > { %v574_v4 = vrot.slane %v573_v58, 2 }
  0x44   : > { %v551_v34 = vrot.slane %v550_v27, 1  ;;  %v558_v39 = vrot.slane %v557_v28, 1 }
  0x46   : > { %v1015_v46 = vpop.eup %1014  ;;  %v559_v50 = vadd.f32 %v558_v39, %v557_v28 }
  0x47   : > { %v1017_v48 = vpop.eup %1016  ;;  %v526_v49 = vsel %vm505_vm0, %v1015_v46, 0.0  ;;  %v552_v46 = vadd.f32 %v551_v34, %v550_v27  ;;  %v669_v34 = vld [vmem:[%s1292_s28] ss:$8 sm:$0x3] }
  0x48   : > { %v1019_v51 = vpop.eup %1018  ;;  %v527_v52 = vrot.slane %v526_v49, 4  ;;  %v533_v53 = vsel %vm505_vm0, %v1017_v48, 0.0 }
  0x49   : > { %v534_v55 = vrot.slane %v533_v53, 4  ;;  %v608_v56 = vmul.f32 0.6931472, %v1019_v51 }
  0x4a   : > { %v528_v57 = vadd.f32 %v527_v52, %v526_v49 }
  0x4b   : > { %v535_v60 = vadd.f32 %v534_v55, %v533_v53  ;;  %v609_v61 = vmul.f32 5.0, %v608_v56  ;;  %v566_v56 = vadd.f32 %v565_v44, %v564_v35 }
  0x4c   : > { %v529_v63 = vrot.slane %v528_v57, 2 }
  0x4d   : > { %v536_v1 = vrot.slane %v535_v60, 2  ;;  %v611_v2 = vsub.f32 %v596_v45, %v609_v61  ;;  %v652_v45 = vunpack.c.l.s4 %v1142_v37 }
  0x4e   : > { %v530_v3 = vadd.f32 %v529_v63, %v528_v57 }
  0x4f   : > { %v537_v6 = vadd.f32 %v536_v1, %v535_v60  ;;  %v613_v7 = vand.u32 2147483647, %v611_v2  ;;  %v620_v9 = vmul.f32 0.5, %v611_v2  ;;  %v653_v57 = vunpack.c.0.s8 %v652_v45 }
  0x50   : > { %v531_v11 = vrot.slane %v530_v3, 1 }
  0x51   : > { %v538_v14 = vrot.slane %v537_v6, 1  ;;  %vm619_vm6 = vcmp.lt.f32.partialorder %v613_v7, 1.0  ;;  %v621_v15 = vmul.f32 %v620_v9, %v611_v2  ;;  %v907_v16 = vadd.f32 -0.5, %v613_v7 }
  0x52   : > { %v532_v17 = vadd.f32 %v531_v11, %v530_v3  ;;  %v567_v2 = vrot.slane %v566_v56, 2  ;;  %v656_v5 = vsub.s32 %v653_v57, %v1303_v18  ;;  %v575_v9 = vadd.f32 %v574_v4, %v573_v58 }
  0x53   : > { %v539_v20 = vadd.f32 %v538_v14, %v537_v6  ;;  %v623_v24 = vsel %vm619_vm6, %v621_v15, %v907_v16 }
  0x54   : > { %1020 = vlog2.f32 %v532_v17  ;;  %v908_v26 = vrot.slane %v623_v24, 10  ;;  %v568_v8 = vadd.f32 %v567_v2, %v566_v56  ;;  %v576_v15 = vrot.slane %v575_v9, 1 }
  0x55   : > { %1022 = vlog2.f32 %v539_v20 }
  0x56   : > { %v628_v30 = vadd.f32 %v908_v26, %v618_v22  ;;  %v569_v14 = vrot.slane %v568_v8, 1  ;;  %v577_v22 = vadd.f32 %v576_v15, %v575_v9 }
  0x58   : > { %v631_v32 = vcombine.high %v628_v30, %v628_v30  ;;  %v634_v33 = vsel %vm633_vm7, %v628_v30, 0.0  ;;  %v570_v18 = vadd.f32 %v569_v14, %v568_v8 }
  0x59   : > { %v635_v36 = vrot.slane %v634_v33, 4 }
  0x5a   : > { %v641_v41 = vsel %vm633_vm7, %v631_v32, 0.0 }
  0x5b   : > { %v636_v42 = vadd.f32 %v635_v36, %v634_v33  ;;  %v642_v43 = vrot.slane %v641_v41, 4 }
  0x5d   : > { %v637_v48 = vrot.slane %v636_v42, 2  ;;  %v643_v38 = vadd.f32 %v642_v43, %v641_v41 }
  0x5e   : > { %v1021_v49 = vpop.eup %1020 }
  0x5f   : > { %v1023_v51 = vpop.eup %1022  ;;  %v541_v52 = vmul.f32 0.6931472, %v1021_v49  ;;  %v638_v53 = vadd.f32 %v637_v48, %v636_v42  ;;  %v644_v54 = vrot.slane %v643_v38, 2 }
  0x60   : > { %v543_v55 = vmul.f32 0.6931472, %v1023_v51 }
  0x61   : > { %v578_v59 = vsub.f32 %v552_v46, %v541_v52  ;;  %v639_v60 = vrot.slane %v638_v53, 1  ;;  %v645_v61 = vadd.f32 %v644_v54, %v643_v38 }
  0x62   : > { %v579_v62 = vsub.f32 %v559_v50, %v543_v55 }
  0x63   : > { %v580_v63 = vmul.f32 1.442695, %v578_v59  ;;  %v640_v0 = vadd.f32 %v639_v60, %v638_v53  ;;  %v646_v1 = vrot.slane %v645_v61, 1 }
  0x64   : > { %v582_v3 = vmul.f32 1.442695, %v579_v62 }
  0x65   : > { %1024 = vpow2.f32 %v580_v63  ;;  %v647_v6 = vadd.f32 %v646_v1, %v645_v61 }
  0x66   : > { %1026 = vpow2.f32 %v582_v3 }
  0x67   : > { %v650_v7 = vcombine.low %v640_v0, %v647_v6 }
  0x69   : > { %v657_v11 = vrot.slane %v650_v7, %v656_v5 }
  0x6b   : > { %v664_v12 = vrot.slane %v657_v11, %v656_v5 }
  0x6d   : > { %v666_v16 = vsel %vm629_vm1, %v664_v12, 0.0 }
  0x6e   : > { %v697_v17 = vadd.f32 %v910_v13, %v666_v16 }
  0x6f   : > { %v1025_v19 = vpop.eup %1024 }
  0x70   : > { %v1027_v20 = vpop.eup %1026  ;;  %v584_v21 = vsub.f32 1.0, %v1025_v19  ;;  %911 = vst.msk [vmem:[%s1292_s28 + $0x1] ss:$8 sm:$0x3] %vm1307_vm2, %v697_v17 }
  0x71   : > { %v585_v24 = vsub.f32 1.0, %v1027_v20 }
  0x72   : > { %v586_v25 = vmul.f32 %v584_v21, %v584_v21 }
  0x73   : > { %v587_v26 = vmul.f32 %v585_v24, %v585_v24 }
  0x74   : > { %v588_v27 = vmul.f32 %v586_v25, %v570_v18 }
  0x75   : > { %v589_v28 = vmul.f32 %v587_v26, %v577_v22 }
  0x76   : > { %v590_v10 = vmul.f32 %v588_v27, %v578_v59 }
  0x77   : > { %v591_v29 = vmul.f32 %v589_v28, %v579_v62 }
  0x78   : > { %v592_v30 = vsub.f32 0.0, %v590_v10 }
  0x79   : > { %v593_v31 = vsub.f32 0.0, %v591_v29 }
  0x7b   : > { %v672_v32 = vcombine.low %v592_v30, %v593_v31 }
  0x7d   : > { %v679_v33 = vrot.slane %v672_v32, %v656_v5 }
  0x7f   : > { %v686_v35 = vrot.slane %v679_v33, %v656_v5 }
  0x81   : > { %v688_v36 = vadd.f32 %v686_v35, %v669_v34 }
  0x83   : > { %693 = vst.msk [vmem:[%s1292_s28] ss:$8 sm:$0x3] %vm1307_vm2, %v688_v36 }
  0x84   : > { %1041 = shalt.err (!%p1038_p10)
}
  0x85   : > { %s1042_s14 = scalar_lea.hbm %s1373_s20, 256  ;;  %s1046_s28 = scalar_lea.hbm %s1476_s19, 1024 }
  0x86   : > { %p1043_p11 = scmp.ne.s32.totalorder %s1373_s20, %s1042_s14  ;;  %p1047_p0 = scmp.lt.u32.totalorder %s1373_s20, %s1476_s19 }
  0x87   : > { %p1048_p1 = scmp.lt.u32.totalorder %s1046_s28, %s1042_s14  ;;  %p1050_p3 = scmp.lt.u32.totalorder %s1042_s14, %s1373_s20 }
  0x88   : > { %p1044_p12 = pnand %p1043_p11, %p1241_p6 }
  0x89   : > { %p1049_p2 = por %p1048_p1, %p1047_p0 }
  0x8a   : > { %p1045_p13 = pneg %p1044_p12 }
  0x8b   : > { %p1051_p4 = por %p1050_p3, %p1049_p2 }
  0x8d   : > { %p1052_p5 = pnand %p1051_p4, %p1045_p13 }
  0x8f   : > { %1055 = shalt.err (!%p1052_p5)
}
  0x90   : > { %920 = dma.vmem_to_hbm [thread:$0]  (%p1241_p6), %s1375_s10, 256, %s1373_s20, %s706_s26  }
  0x91 PF: > { %s1478_s23 = sld [smem:[#allocation10_spill]]  ;;  %s1479_s24 = sld [smem:[#allocation5_spill]] }
  0x97   : > { %p926_p8 = scmp.ge.s32.totalorder %s1478_s23, 2  ;;  %s734_s29 = sand.u32 1, %s1479_s24  }
  0x98   : > { %s735_s30 = scalar_lea.sflag [#allocation3], %s734_s29 }
  0x99   : > { %p923_p9 = pnand %p926_p8, %p1248_p7 }
  0x9b   : > { %1097 = dma.done.wait (!%p923_p9), %s735_s30, 256  }
  0x9c   : > { %1099 = vsyncadd (!%p923_p9), %s735_s30, 4294967040  ;;  %s19_s30 = sadd.s32 1, %s1478_s23   ;;  %s1481_s9 = sld [smem:[#allocation6_spill]] }
  0x9d   : > { %p16_p10 = scmp.ge.s32.totalorder %s19_s30, 10   ;;  %s1482_s23 = sld [smem:[#allocation15_spill]] }
  0x9e   : > { %s1483_s24 = sld [smem:[#allocation7_spill]]  ;;  %s1484_s25 = sld [smem:[#allocation8_spill]] }
  0x9f   : > { %s1485_s26 = sld [smem:[#allocation9_spill]]  ;;  %s1486_s27 = sld [smem:[#allocation11_spill]] }
  0xa0   : > { %s1487_s28 = sld [smem:[#allocation12_spill]]  ;;  %s1488_s29 = sld [smem:[#allocation14_spill]] }
  0xa1   : > { %s1489_s21 = smov %s1106_s22  ;;  %18 = sbr.rel (!%p16_p10) target bundleno = 8 (0x8), region = 97 }
  0xa2   : > { %s1490_s22 = smov %s1481_s9 }
  0xa8   :  { %740 = vsyncpa [#allocation3], 1 }
  0xa9   :  { %742 = vsyncpa [#allocation3 + $0x1], 1 }

</bundles_post_ra>
